<compile_context>
chip_gen: v6e
topology: v6e:2x2x1
jax: 0.10.0
libtpu: 0.0.40
codegen_flags: <defaults>
</compile_context>

<pallas_src>
import functools

import jax
import jax.numpy as jnp
from jax import lax
from jax.experimental import pallas as pl
from jax.experimental.pallas import tpu as pltpu


def _round_up(x, m):
    return ((x + m - 1) // m) * m


def _embedding_kernel(ids_ref, table_ref, out_ref, *scratch,
                      n_tokens, nsem, unroll, table_in_vmem):
    """Gather table_ref[ids] rows into the current (tile_tokens, D) out block.

    ids_ref  : (N,) int32 in SMEM (scalar prefetch)
    table_ref: (V, D) table -- VMEM-resident block, or raw HBM ref (pl.ANY)
    out_ref  : (tile_tokens, D) output block in VMEM
    scratch  : (sems,) DMA-semaphore ring on the HBM-gather path, else empty
    """
    tile_tokens = int(out_ref.shape[0])
    base = pl.program_id(0) * tile_tokens
    n_valid = jnp.clip(n_tokens - base, 0, tile_tokens)  # real tokens in tile

    if table_in_vmem:
        # Small-table path: the whole table lives in VMEM (the pipeline fetched
        # it from HBM once); gather rows with plain dynamic vector loads/stores.
        def gather(hi):
            def body(j, carry):
                row = ids_ref[base + j]
                out_ref[pl.ds(j, 1), :] = table_ref[pl.ds(row, 1), :]
                return carry
            if isinstance(hi, int):                 # full tile: static bound
                lax.fori_loop(0, hi, body, 0, unroll=unroll)
            else:                                   # partial last tile
                lax.fori_loop(0, hi, body, 0)
    else:
        # Large-table path: table stays in HBM; one async row DMA per token,
        # bounded in flight by a small ring of `nsem` semaphores.
        sems = scratch[0]

        def row_copy(j):
            # Single source of truth for the descriptor: .start() and .wait()
            # below rebuild exactly the same (src row, dst row, semaphore)
            # copy, so the waited byte count can never diverge from the one
            # that was started.
            row = ids_ref[base + j]
            return pltpu.make_async_copy(
                table_ref.at[pl.ds(row, 1), :],
                out_ref.at[pl.ds(j, 1), :],
                sems.at[j % nsem],
            )

        def gather(hi):
            def issue(j, carry):
                @pl.when(j >= nsem)                 # wait before reusing slot
                def _():
                    row_copy(j - nsem).wait()
                row_copy(j).start()
                return carry

            if isinstance(hi, int):                 # full tile: static bound
                lax.fori_loop(0, hi, issue, 0, unroll=unroll)
            else:                                   # partial last tile
                lax.fori_loop(0, hi, issue, 0)

            def drain(j, carry):                    # wait for the tail copies
                row_copy(j).wait()
                return carry

            lo = max(hi - nsem, 0) if isinstance(hi, int) else jnp.maximum(hi - nsem, 0)
            lax.fori_loop(lo, hi, drain, 0)

    if n_tokens % tile_tokens == 0:
        gather(tile_tokens)                         # every tile is full
    else:
        is_full = base + tile_tokens <= n_tokens

        @pl.when(is_full)
        def _():
            gather(tile_tokens)

        @pl.when(jnp.logical_not(is_full))          # last tile: skip pad rows
        def _():
            gather(n_valid)
    # Rows j >= n_valid (padding) are never written; the wrapper slices them off.
    # TODO(synk): optionally zero-store rows whose id == pad_idx instead of
    # gathering the (already zero) pad row -- saves HBM trips on pad-heavy batches.


def embedding_forward(x, table, *, tile_tokens=512, nsem=16, unroll=8,
                      table_vmem_bytes_limit=12 * 1024 * 1024,
                      force_hbm_gather=False):
    """x: (B, S) integer token ids; table: (V, D). Returns (B, S, D) in table.dtype.

    The kernel is dtype-generic: pass a bfloat16 table to halve gather and
    writeback bytes (float32 keeps exact nn.Embedding parity).
    """
    B, S = x.shape
    V, D = table.shape
    N = B * S
    itemsize = table.dtype.itemsize

    # Token ids are scalar-prefetched into SMEM (1-D SMEM pads to the next
    # power of two bytes) -- guard the budget instead of silently overflowing.
    if 4 * N > 512 * 1024:
        # TODO(synk): for very large B*S pass ids as a per-tile SMEM-blocked
        # input (pl.BlockSpec((tile_tokens,), lambda i: (i,),
        # memory_space=pltpu.SMEM)) instead of scalar-prefetching all of them.
        raise ValueError(
            f"B*S={N} token ids would need >512 KiB of SMEM; split the batch "
            "or switch to per-tile SMEM-blocked ids.")

    # Sublane granularity of the output block scales with dtype packing.
    sub = 8 * max(1, 4 // itemsize)
    # Tokens per grid step: big enough to amortise the ~0.35 us per-step cost
    # (sweep 256-1024 for large N), capped so tiny inputs do not over-pad and
    # so the grid has >= 2 steps whenever possible (keeps both v7x TCs busy
    # under dimension_semantics=("parallel",)).
    tt = min(tile_tokens, _round_up(max(1, -(-N // 2)), sub))
    tt = max(sub, _round_up(tt, sub))
    n_pad = _round_up(N, tt)
    grid = (n_pad // tt,)

    # nn.Embedding raises on out-of-range ids; here they are clamped so the
    # row access stays in bounds (documented semantic divergence).
    ids = jnp.clip(x.reshape(-1).astype(jnp.int32), 0, V - 1)

    table_bytes = V * D * itemsize
    out_block_bytes = tt * D * itemsize
    table_in_vmem = (not force_hbm_gather) and table_bytes <= table_vmem_bytes_limit
    # NOTE: on the 128 MiB-VMEM parts (v5e/v6e) table_vmem_bytes_limit can be
    # raised to ~48 MiB; keep it <= ~16-24 MiB on v7x (64 MiB VMEM).

    if table_in_vmem:
        # Whole table as one VMEM block with a constant index_map: the pipeline
        # DMAs it from HBM once (block index never changes), so per-token HBM
        # traffic disappears (N*D random reads -> one sequential V*D load).
        table_spec = pl.BlockSpec((V, D), lambda i, ids_ref: (0, 0))
        scratch_shapes = []
        needed = 2 * table_bytes + 2 * out_block_bytes + (4 << 20)
        compiler_params = pltpu.CompilerParams(
            dimension_semantics=("parallel",),
            # v5e's scoped-VMEM default is only 16 MiB -- set it explicitly.
            vmem_limit_bytes=int(max(needed, 32 << 20)),
        )
    else:
        # Table never leaves HBM (VMEM-safe for any vocab size); rows are
        # DMA-gathered straight from HBM into the output block.
        table_spec = pl.BlockSpec(memory_space=pl.ANY)
        scratch_shapes = [pltpu.SemaphoreType.DMA((nsem,))]
        compiler_params = pltpu.CompilerParams(
            dimension_semantics=("parallel",))

    kernel = functools.partial(
        _embedding_kernel, n_tokens=N, nsem=nsem, unroll=unroll,
        table_in_vmem=table_in_vmem)

    out_flat = pl.pallas_call(
        kernel,
        out_shape=jax.ShapeDtypeStruct((n_pad, D), table.dtype),
        grid_spec=pltpu.PrefetchScalarGridSpec(
            num_scalar_prefetch=1,                 # ids -> SMEM
            grid=grid,
            in_specs=[table_spec],
            # Output last dim is the full (unpadded) D: the block is written
            # only by per-row copies and then DMA'd back, so no 128-lane pad
            # (and no per-call table pad/cast) is needed.
            out_specs=pl.BlockSpec((tt, D), lambda i, ids_ref: (i, 0)),
            scratch_shapes=scratch_shapes,
        ),
        compiler_params=compiler_params,
    )(ids, table)

    return out_flat[:N].reshape(B, S, D)


def build_embedding_matrix(key, vocab_size, embedding_dim, pad_idx=0):
    """Deterministic stand-in for EmbeddingLayer._build_embedding_matrix('random')."""
    table = jax.random.normal(key, (vocab_size, embedding_dim), dtype=jnp.float32)
    table = table.at[pad_idx].set(0.0)   # padding_idx row zeroed, as nn.Embedding does
    # TODO(synk): build_type='pretrained' loads GloVe vectors from disk; not
    # reproducible in a self-contained script.
    return table


if __name__ == "__main__":
    key = jax.random.PRNGKey(0)
    k_table, k_ids, k_ids2 = jax.random.split(key, 3)

    VOCAB = 16       # len(vocab.stoi); PAD at index 0
    EMB_DIM = 32     # small stand-in for embedding_dim=300
    B, S = 2, 8
    PAD_IDX = 0

    table = build_embedding_matrix(k_table, VOCAB, EMB_DIM, pad_idx=PAD_IDX)
    x = jax.random.randint(k_ids, (B, S), 0, VOCAB, dtype=jnp.int32)
    ref = table[x]

    # 1) default dispatch: tiny table -> VMEM-resident gather path.
    out = jax.block_until_ready(embedding_forward(x, table))
    assert out.shape == (B, S, EMB_DIM)
    assert jnp.allclose(out, ref, atol=1e-6), "VMEM-table path mismatch"
    assert jnp.allclose(out[x == PAD_IDX], 0.0), "PAD rows must be zero"

    # 2) forced HBM row-gather path (what large-vocab tables use).
    out_hbm = jax.block_until_ready(
        embedding_forward(x, table, force_hbm_gather=True))
    assert jnp.allclose(out_hbm, ref, atol=1e-6), "HBM-gather path mismatch"

    # 3) ragged token count -> exercises the partial-last-tile guard.
    x2 = jax.random.randint(k_ids2, (3, 5), 0, VOCAB, dtype=jnp.int32)
    out2 = jax.block_until_ready(
        embedding_forward(x2, table, force_hbm_gather=True))
    assert out2.shape == (3, 5, EMB_DIM)
    assert jnp.allclose(out2, table[x2], atol=1e-6), "partial-tile mismatch"

    # 4) bf16 table on the HBM path: halves gather + writeback bytes.
    table_bf16 = table.astype(jnp.bfloat16)
    out_bf16 = jax.block_until_ready(
        embedding_forward(x, table_bf16, force_hbm_gather=True))
    assert out_bf16.dtype == jnp.bfloat16
    assert jnp.allclose(out_bf16.astype(jnp.float32),
                        table_bf16.astype(jnp.float32)[x]), "bf16 path mismatch"

    print("KERNEL_OK")
</pallas_src>

<mosaic_0001>
module attributes {stable_mosaic.version = 11 : i64} {
  func.func @_embedding_kernel(%arg0: i32, %arg1: memref<16xi32, #tpu.memory_space<smem>>, %arg2: memref<16x32xf32, #tpu.memory_space<vmem>>, %arg3: memref<8x32xf32, #tpu.memory_space<vmem>>) attributes {dimension_semantics = [#tpu.dimension_semantics<parallel>], iteration_bounds = array<i64: 2>, scalar_prefetch = 1 : i64, scratch_operands = 0 : i64, tpu.core_type = #tpu.core_type<tc>, window_params = [{pipeline_mode = #tpu.pipeline_mode<synchronous>, transform_indices = @transform_0, window_bounds = array<i64: 16, 32>}, {transform_indices = @transform_1, window_bounds = array<i64: 8, 32>}]} {
    %c8_i32 = arith.constant 8 : i32
    %0 = arith.muli %arg0, %c8_i32 : i32
    %c0_i32 = arith.constant 0 : i32
    %1 = arith.addi %0, %c0_i32 : i32
    %2 = arith.index_cast %1 : i32 to index
    %3 = memref.load %arg1[%2] : memref<16xi32, #tpu.memory_space<smem>>
    %4 = arith.index_cast %3 : i32 to index
    %c0 = arith.constant 0 : index
    %5 = vector.load %arg2[%4, %c0] : memref<16x32xf32, #tpu.memory_space<vmem>>, vector<1x32xf32>
    %6 = arith.index_cast %c0_i32 : i32 to index
    %c0_0 = arith.constant 0 : index
    %7 = vector.load %arg3[%6, %c0_0] : memref<8x32xf32, #tpu.memory_space<vmem>>, vector<1x32xf32>
    tpu.vector_store %arg3[%6, %c0_0], %5 {strides = array<i32>} : memref<8x32xf32, #tpu.memory_space<vmem>>, vector<1x32xf32>,
    %c1_i32 = arith.constant 1 : i32
    %8 = arith.addi %0, %c1_i32 : i32
    %9 = arith.index_cast %8 : i32 to index
    %10 = memref.load %arg1[%9] : memref<16xi32, #tpu.memory_space<smem>>
    %11 = arith.index_cast %10 : i32 to index
    %c0_1 = arith.constant 0 : index
    %12 = vector.load %arg2[%11, %c0_1] : memref<16x32xf32, #tpu.memory_space<vmem>>, vector<1x32xf32>
    %13 = arith.index_cast %c1_i32 : i32 to index
    %c0_2 = arith.constant 0 : index
    %14 = vector.load %arg3[%13, %c0_2] : memref<8x32xf32, #tpu.memory_space<vmem>>, vector<1x32xf32>
    tpu.vector_store %arg3[%13, %c0_2], %12 {strides = array<i32>} : memref<8x32xf32, #tpu.memory_space<vmem>>, vector<1x32xf32>,
    %c2_i32 = arith.constant 2 : i32
    %15 = arith.addi %0, %c2_i32 : i32
    %16 = arith.index_cast %15 : i32 to index
    %17 = memref.load %arg1[%16] : memref<16xi32, #tpu.memory_space<smem>>
    %18 = arith.index_cast %17 : i32 to index
    %c0_3 = arith.constant 0 : index
    %19 = vector.load %arg2[%18, %c0_3] : memref<16x32xf32, #tpu.memory_space<vmem>>, vector<1x32xf32>
    %20 = arith.index_cast %c2_i32 : i32 to index
    %c0_4 = arith.constant 0 : index
    %21 = vector.load %arg3[%20, %c0_4] : memref<8x32xf32, #tpu.memory_space<vmem>>, vector<1x32xf32>
    tpu.vector_store %arg3[%20, %c0_4], %19 {strides = array<i32>} : memref<8x32xf32, #tpu.memory_space<vmem>>, vector<1x32xf32>,
    %c3_i32 = arith.constant 3 : i32
    %22 = arith.addi %0, %c3_i32 : i32
    %23 = arith.index_cast %22 : i32 to index
    %24 = memref.load %arg1[%23] : memref<16xi32, #tpu.memory_space<smem>>
    %25 = arith.index_cast %24 : i32 to index
    %c0_5 = arith.constant 0 : index
    %26 = vector.load %arg2[%25, %c0_5] : memref<16x32xf32, #tpu.memory_space<vmem>>, vector<1x32xf32>
    %27 = arith.index_cast %c3_i32 : i32 to index
    %c0_6 = arith.constant 0 : index
    %28 = vector.load %arg3[%27, %c0_6] : memref<8x32xf32, #tpu.memory_space<vmem>>, vector<1x32xf32>
    tpu.vector_store %arg3[%27, %c0_6], %26 {strides = array<i32>} : memref<8x32xf32, #tpu.memory_space<vmem>>, vector<1x32xf32>,
    %c4_i32 = arith.constant 4 : i32
    %29 = arith.addi %0, %c4_i32 : i32
    %30 = arith.index_cast %29 : i32 to index
    %31 = memref.load %arg1[%30] : memref<16xi32, #tpu.memory_space<smem>>
    %32 = arith.index_cast %31 : i32 to index
    %c0_7 = arith.constant 0 : index
    %33 = vector.load %arg2[%32, %c0_7] : memref<16x32xf32, #tpu.memory_space<vmem>>, vector<1x32xf32>
    %34 = arith.index_cast %c4_i32 : i32 to index
    %c0_8 = arith.constant 0 : index
    %35 = vector.load %arg3[%34, %c0_8] : memref<8x32xf32, #tpu.memory_space<vmem>>, vector<1x32xf32>
    tpu.vector_store %arg3[%34, %c0_8], %33 {strides = array<i32>} : memref<8x32xf32, #tpu.memory_space<vmem>>, vector<1x32xf32>,
    %c5_i32 = arith.constant 5 : i32
    %36 = arith.addi %0, %c5_i32 : i32
    %37 = arith.index_cast %36 : i32 to index
    %38 = memref.load %arg1[%37] : memref<16xi32, #tpu.memory_space<smem>>
    %39 = arith.index_cast %38 : i32 to index
    %c0_9 = arith.constant 0 : index
    %40 = vector.load %arg2[%39, %c0_9] : memref<16x32xf32, #tpu.memory_space<vmem>>, vector<1x32xf32>
    %41 = arith.index_cast %c5_i32 : i32 to index
    %c0_10 = arith.constant 0 : index
    %42 = vector.load %arg3[%41, %c0_10] : memref<8x32xf32, #tpu.memory_space<vmem>>, vector<1x32xf32>
    tpu.vector_store %arg3[%41, %c0_10], %40 {strides = array<i32>} : memref<8x32xf32, #tpu.memory_space<vmem>>, vector<1x32xf32>,
    %c6_i32 = arith.constant 6 : i32
    %43 = arith.addi %0, %c6_i32 : i32
    %44 = arith.index_cast %43 : i32 to index
    %45 = memref.load %arg1[%44] : memref<16xi32, #tpu.memory_space<smem>>
    %46 = arith.index_cast %45 : i32 to index
    %c0_11 = arith.constant 0 : index
    %47 = vector.load %arg2[%46, %c0_11] : memref<16x32xf32, #tpu.memory_space<vmem>>, vector<1x32xf32>
    %48 = arith.index_cast %c6_i32 : i32 to index
    %c0_12 = arith.constant 0 : index
    %49 = vector.load %arg3[%48, %c0_12] : memref<8x32xf32, #tpu.memory_space<vmem>>, vector<1x32xf32>
    tpu.vector_store %arg3[%48, %c0_12], %47 {strides = array<i32>} : memref<8x32xf32, #tpu.memory_space<vmem>>, vector<1x32xf32>,
    %c7_i32 = arith.constant 7 : i32
    %50 = arith.addi %0, %c7_i32 : i32
    %51 = arith.index_cast %50 : i32 to index
    %52 = memref.load %arg1[%51] : memref<16xi32, #tpu.memory_space<smem>>
    %53 = arith.index_cast %52 : i32 to index
    %c0_13 = arith.constant 0 : index
    %54 = vector.load %arg2[%53, %c0_13] : memref<16x32xf32, #tpu.memory_space<vmem>>, vector<1x32xf32>
    %55 = arith.index_cast %c7_i32 : i32 to index
    %c0_14 = arith.constant 0 : index
    %56 = vector.load %arg3[%55, %c0_14] : memref<8x32xf32, #tpu.memory_space<vmem>>, vector<1x32xf32>
    tpu.vector_store %arg3[%55, %c0_14], %54 {strides = array<i32>} : memref<8x32xf32, #tpu.memory_space<vmem>>, vector<1x32xf32>,
    %c8_i32_15 = arith.constant 8 : i32
    return
  }
  func.func @transform_0(%arg0: i32, %arg1: memref<16xi32, #tpu.memory_space<smem>>) -> (i32, i32) {
    %c0_i32 = arith.constant 0 : i32
    %c0_i32_0 = arith.constant 0 : i32
    %c0_i32_1 = arith.constant 0 : i32
    return %c0_i32, %c0_i32_0 : i32, i32
  }
  func.func @transform_1(%arg0: i32, %arg1: memref<16xi32, #tpu.memory_space<smem>>) -> (i32, i32) {
    %c0_i32 = arith.constant 0 : i32
    %c0_i32_0 = arith.constant 0 : i32
    return %arg0, %c0_i32 : i32, i32
  }
}

</mosaic_0001>

<bundles_post_ra>
// kernel: tpu_custom_call.1
= control target key start
LH: loop header
LB: loop body
LE: loop exit
PB: predicated region body
PF: predicated region fallthrough
CT: control target
= control target key end

     0   :  { %s403_s9 = smov [#allocation3]   ;;  %s551_s0 = inlined_call_operand.hbm [shape: s32[16], index: 0, kind: input, shape index: {}]   ;;  %s552_s1 = inlined_call_operand.hbm [shape: f32[16,32], index: 1, kind: input, shape index: {}]   ;;  %s553_s2 = inlined_call_operand.hbm [shape: f32[16,32], index: 2, kind: output, shape index: {}]  }
   0x1   :  { %8 = dma.hbm_to_smem %s551_s0, 16, %s403_s9, [#allocation2] }
   0x2   :  { %377 = dma.done.wait [#allocation2], 16 }
   0x3   :  { %378 = vsyncadd [#allocation2], 4294967280 }
   0x4   :  { %10 = sfence }
   0x5   :  { %11 = vsyncpa [#allocation5], 0 }
   0x6   :  { %12 = vsyncpa [#allocation6], 0 }
   0x7   :  { %14 = vsyncpa [#allocation6 + $0x1], 0  ;;  %s426_s12 = smov 0   ;;  %s428_s13 = smov 0  }
   0x8   :  { %s430_s14 = smov 0   ;;  %s432_s15 = smov 0  }
   0x9 LB: > { %s447_s0 = sadd.s32 4294967295, %s401_s15   ;;  %s237_s16 = sadd.s32 4294967294, %s401_s15   ;;  %s401_s15 = sphi %s432_s15, %s563_s15   ;;  %s397_s14 = sphi %s430_s14, %s562_s14   ;;  %s393_s13 = sphi %s428_s13, %s561_s13   ;;  %s389_s12 = sphi %s426_s12, %s560_s12  }
   0xa   : > { %s451_s17 = sadd.s32 1, %s401_s15   ;;  %s48_s18 = sadd.s32 1, %s397_s14 }
   0xb   : > { %s45_s19 = ssub.s32 %s401_s15, %s451_s17  ;;  %p58_p0 = scmp.ne.s32.totalorder %s397_s14, %s393_s13 }
   0xc   : > { %p46_p1 = scmp.eq.s32.totalorder %s45_s19, 0  ;;  %p59_p2 = scmp.eq.s32.totalorder %s447_s0, 1 }
   0xd   : > { %p64_p3 = scmp.ne.s32.totalorder %s393_s13, %s389_s12  ;;  %p65_p4 = scmp.eq.s32.totalorder %s237_s16, 1 }
   0xe   : > { %s462_s20 = scalar_select %p46_p1, %s397_s14, %s48_s18  }
   0xf   : > { %p464_p5 = por %p59_p2, %p58_p0  ;;  %p468_p6 = por %p65_p4, %p64_p3 }
  0x10   : > { %p238_p7 = scmp.ge.s32.totalorder %s401_s15, 1  ;;  %p72_p8 = scmp.lt.s32.totalorder %s401_s15, 3 }
  0x11   : > { %s556_s22 = scalar_select %p468_p6, 1, 0 }
  0x12   : > { %p262_p9 = scmp.eq.s32.totalorder %s447_s0, 0  ;;  %p475_p10 = pnand %p238_p7, %p72_p8 }
  0x13   : > { %s404_s24 = smov [#allocation4]  }
  0x14   : > { %s84_s25 = sshll.u32 %s404_s24, 4  ;;  %p254_p11 = pneg %p475_p10  ;;  %s85_s25 = int_to_ptr.vmem [resolvable:$true] %s84_s25 }
  0x15   : > { %s320_s26 = scalar_lea.vmem %s85_s25, 256  ;;  %p328_p3 = scmp.lt.s32.totalorder %s85_s25, %s85_s25 }
  0x16   : > { %p255_p12 = pnand %p262_p9, %p254_p11  ;;  %p321_p0 = scmp.ne.s32.totalorder %s85_s25, %s320_s26 }
  0x17   : > { %p329_p4 = scmp.lt.s32.totalorder %s320_s26, %s320_s26 }
  0x18   : > { %p311_p13 = pneg %p255_p12 }
  0x19   : > { %p330_p6 = por %p329_p4, %p328_p3 }
  0x1a   : > { %p323_p1 = pnand %p321_p0, %p311_p13 }
  0x1c   : > { %p324_p2 = pneg %p323_p1 }
  0x1e   : > { %p331_p7 = pnand %p330_p6, %p324_p2 }
  0x20   : > { %334 = shalt.err (!%p331_p7)
}
  0x21   : > { %s405_s27 = smov 128   ;;  %s406_s28 = smov 8  }
  0x22   : > { %257 = dma.hbm_to_vmem [thread:$0]  (!%p255_p12), %s552_s1, 256, %s85_s25, [#allocation5], %s405_s27, %s405_s27, %s406_s28  }
  0x23   : > { %100 = sbr.rel (%p475_p10) target bundleno = 79 (0x4f), region = 24 }
  0x28   : > { %380 = dma.done.wait (%p262_p9), [#allocation5], 256  }
  0x29   : > { %382 = vsyncadd (%p262_p9), [#allocation5], 4294967040  ;;  %s554_s3 = sand.u32 1, %s393_s13   ;;  %s243_s4 = sshll.u32 %s447_s0, 3  ;;  %vm119_vm0 = vcmask 253952  }
  0x2a   : > { %s242_s5 = sshll.u32 %s554_s3, 3  ;;  %s116_s6 = sld [smem:[#allocation3 + %s243_s4]] }
  0x2b   : > { %s121_s7 = sadd.s32 1, %s243_s4  ;;  %s126_s8 = sadd.s32 2, %s243_s4 }
  0x2c   : > { %s122_s9 = sld [smem:[#allocation3 + %s121_s7]]  ;;  %s131_s10 = sadd.s32 3, %s243_s4 }
  0x2d   : > { %s127_s11 = sld [smem:[#allocation3 + %s126_s8]]  ;;  %s136_s16 = sadd.s32 4, %s243_s4 }
  0x2e   : > { %s132_s18 = sld [smem:[#allocation3 + %s131_s10]]  ;;  %s141_s19 = sadd.s32 5, %s243_s4 }
  0x2f   : > { %s137_s23 = sld [smem:[#allocation3 + %s136_s16]]  ;;  %s146_s26 = sadd.s32 6, %s243_s4 }
  0x30   : > { %s117_s24 = scalar_lea.vmem [#allocation4], %s116_s6  ;;  %s142_s25 = sld [smem:[#allocation3 + %s141_s19]] }
  0x31   : > { %v118_v0 = vld [vmem:[%s117_s24] sm:$0x1]  ;;  %s114_s27 = scalar_lea.vmem [#allocation7], %s242_s5  ;;  %s147_s28 = sld [smem:[#allocation3 + %s146_s26]] }
  0x32   : > { %120 = vst.msk [vmem:[%s114_s27] sm:$0x1] %vm119_vm0, %v118_v0  ;;  %s151_s29 = sadd.s32 7, %s243_s4  ;;  %s123_s3 = scalar_lea.vmem [#allocation4], %s122_s9 }
  0x33   : > { %s152_s30 = sld [smem:[#allocation3 + %s151_s29]]  ;;  %v124_v1 = vld [vmem:[%s123_s3] sm:$0x1]  ;;  %s128_s7 = scalar_lea.vmem [#allocation4], %s127_s11 }
  0x34   : > { %125 = vst.msk [vmem:[%s114_s27 + $0x1] sm:$0x1] %vm119_vm0, %v124_v1  ;;  %v129_v2 = vld [vmem:[%s128_s7] sm:$0x1]  ;;  %s245_s8 = sshll.u32 %s447_s0, 7  ;;  %s133_s10 = scalar_lea.vmem [#allocation4], %s132_s18 }
  0x35   : > { %130 = vst.msk [vmem:[%s114_s27 + $0x2] sm:$0x1] %vm119_vm0, %v129_v2  ;;  %v134_v3 = vld [vmem:[%s133_s10] sm:$0x1]  ;;  %s170_s6 = sshll.u32 %s114_s27, 4  ;;  %s138_s5 = scalar_lea.vmem [#allocation4], %s137_s23  ;;  %s508_s6 = int_to_ptr.vmem [resolvable:$true] %s170_s6 }
  0x36   : > { %135 = vst.msk [vmem:[%s114_s27 + $0x3] sm:$0x1] %vm119_vm0, %v134_v3  ;;  %v139_v4 = vld [vmem:[%s138_s5] sm:$0x1]  ;;  %s143_s4 = scalar_lea.vmem [#allocation4], %s142_s25  ;;  %s505_s11 = scalar_lea.hbm %s553_s2, %s245_s8 }
  0x37   : > { %140 = vst.msk [vmem:[%s114_s27 + $0x4] sm:$0x1] %vm119_vm0, %v139_v4  ;;  %v144_v5 = vld [vmem:[%s143_s4] sm:$0x1]  ;;  %s148_s0 = scalar_lea.vmem [#allocation4], %s147_s28  ;;  %s558_s18 = sand.u32 1, %s393_s13  }
  0x38   : > { %145 = vst.msk [vmem:[%s114_s27 + $0x5] sm:$0x1] %vm119_vm0, %v144_v5  ;;  %v149_v6 = vld [vmem:[%s148_s0] sm:$0x1]  ;;  %s157_s19 = scalar_lea.sflag [#allocation6], %s558_s18  ;;  %s335_s23 = scalar_lea.vmem %s508_s6, 128 }
  0x39   : > { %150 = vst.msk [vmem:[%s114_s27 + $0x6] sm:$0x1] %vm119_vm0, %v149_v6  ;;  %s153_s16 = scalar_lea.vmem [#allocation4], %s152_s30  ;;  %p336_p6 = scmp.ne.s32.totalorder %s508_s6, %s335_s23 }
  0x3a   : > { %v154_v7 = vld [vmem:[%s153_s16] sm:$0x1]  ;;  %s407_s24 = smov [#allocation7]  }
  0x3b   : > { %155 = vst.msk [vmem:[%s114_s27 + $0x7] sm:$0x1] %vm119_vm0, %v154_v7  ;;  %p337_p8 = pnand %p336_p6, %p464_p5  ;;  %s339_s25 = sshll.u32 %s407_s24, 4  ;;  %s340_s25 = int_to_ptr.vmem [resolvable:$false] %s339_s25 }
  0x3c   : > { %s341_s26 = scalar_lea.vmem %s340_s25, 256  ;;  %p342_p10 = scmp.lt.s32.totalorder %s508_s6, %s340_s25 }
  0x3d   : > { %p338_p9 = pneg %p337_p8  ;;  %p343_p11 = scmp.lt.s32.totalorder %s341_s26, %s335_s23 }
  0x3f   : > { %p344_p12 = por %p343_p11, %p342_p10 }
  0x41   : > { %p345_p13 = pnand %p344_p12, %p338_p9 }
  0x43   : > { %348 = shalt.err (!%p345_p13)
}
  0x44   : > { %s349_s27 = scalar_lea.hbm %s505_s11, 128  ;;  %s353_s30 = scalar_lea.hbm %s553_s2, 256 }
  0x45   : > { %p350_p0 = scmp.ne.s32.totalorder %s505_s11, %s349_s27  ;;  %p354_p3 = scmp.lt.s32.totalorder %s505_s11, %s553_s2 }
  0x46   : > { %p355_p4 = scmp.lt.s32.totalorder %s353_s30, %s349_s27 }
  0x47   : > { %p351_p1 = pnand %p350_p0, %p464_p5 }
  0x48   : > { %p356_p7 = por %p355_p4, %p354_p3 }
  0x49   : > { %p352_p2 = pneg %p351_p1 }
  0x4b   : > { %p357_p6 = pnand %p356_p7, %p352_p2 }
  0x4d   : > { %360 = shalt.err (!%p357_p6)
}
  0x4e   : > { %252 = dma.vmem_to_hbm [thread:$0]  (%p464_p5), %s508_s6, 128, %s505_s11, %s157_s19  }
  0x4f PF: > { %p264_p8 = scmp.ge.s32.totalorder %s401_s15, 2  ;;  %s182_s10 = sand.u32 1, %s389_s12  }
  0x50   : > { %p559_p9 = scmp.ne.s32.totalorder %s556_s22, 0  ;;  %s183_s5 = scalar_lea.sflag [#allocation6], %s182_s10 }
  0x52   : > { %p259_p10 = pnand %p264_p8, %p559_p9 }
  0x54   : > { %p260_p11 = pneg %p259_p10 }
  0x56   : > { %384 = dma.done.wait (%p260_p11), %s183_s5, 128  }
  0x57   : > { %386 = vsyncadd (%p260_p11), %s183_s5, 4294967168  ;;  %p17_p12 = scmp.ge.s32.totalorder %s451_s17, 4   ;;  %s560_s12 = smov %s393_s13 }
  0x58   : > { %s561_s13 = smov %s397_s14  ;;  %s562_s14 = smov %s462_s20 }
  0x59   : > { %s563_s15 = smov %s451_s17  ;;  %19 = sbr.rel (!%p17_p12) target bundleno = 9 (0x9), region = 69 }
  0x5e   :  { %188 = vsyncpa [#allocation5], 1 }
  0x5f   :  { %190 = vsyncpa [#allocation5 + $0x1], 1 }
  0x60   :  { %191 = vsyncpa [#allocation6], 1 }
  0x61   :  { %193 = vsyncpa [#allocation6 + $0x1], 1 }

</bundles_post_ra>
